<compile_context>
chip_gen: v7x
topology: tpu7x:2x2x1
jax: 0.10.0
libtpu: 0.0.40
codegen_flags: <defaults>
</compile_context>

<pallas_src>
import math

import numpy as np
import jax
import jax.numpy as jnp
from jax import lax
from jax.experimental import pallas as pl
from jax.experimental.pallas import tpu as pltpu


def _round_up(x: int, m: int) -> int:
    return ((x + m - 1) // m) * m


# ----------------------------------------------------------------------------
# Kernels
# ----------------------------------------------------------------------------

def _make_matmul_kernel(w_resident: bool, nj: int):
    """Tiled masked-linear kernel. Grid = (batch, out, k-reduction)."""

    def kernel(x_ref, w_ref, b_ref, o_ref, acc_ref):
        # x_ref : (tm, tk)            activation tile (bf16)
        # w_ref : resident -> (nk*nj, tk, tn) whole pre-masked weight (bf16)
        #         streamed -> (tk, tn) per-(k, j) weight tile (bf16)
        # b_ref : (1, tn)             bias tile (f32)
        # o_ref : (tm, tn)            output tile
        # acc_ref: (tm, tn)           f32 accumulator, persists across k steps
        j = pl.program_id(1)
        k = pl.program_id(2)

        if w_resident:
            w = w_ref[k * nj + j]          # VMEM-resident: dynamic leading index
        else:
            w = w_ref[...]                  # streamed per grid step

        partial = jnp.dot(x_ref[...], w, preferred_element_type=jnp.float32)

        @pl.when(k == 0)
        def _init():                        # fold zero-init into first step
            acc_ref[...] = partial

        @pl.when(k > 0)
        def _accumulate():
            acc_ref[...] += partial

        @pl.when(k == pl.num_programs(2) - 1)
        def _epilogue():
            o_ref[...] = (acc_ref[...] + b_ref[...].astype(jnp.float32)).astype(
                o_ref.dtype)

    return kernel


def _diag_scale_kernel(x_ref, d_ref, b_ref, o_ref):
    """Diagonal-filter fast path: y = x * d + b (pure VPU, no MXU)."""
    o_ref[...] = (
        x_ref[...].astype(jnp.float32) * d_ref[...].astype(jnp.float32)
        + b_ref[...].astype(jnp.float32)
    ).astype(o_ref.dtype)


# ----------------------------------------------------------------------------
# Tile selection helpers
# ----------------------------------------------------------------------------

def _pick(dim, tile, align):
    """Lane-aligned dims (N / K): single aligned block if it fits, else tiles."""
    tile = _round_up(tile, align)
    if dim <= tile:
        padded = _round_up(dim, align)
        return padded, padded
    padded = _round_up(dim, tile)
    return padded, tile


def _pick_batch(dim, tile):
    """Batch (sublane) axis: pad to 8; try to expose >=2 grid blocks so both
    v7x TensorCores get work, as long as it costs <= 8 extra padded rows."""
    tile = _round_up(tile, 8)
    padded = _round_up(dim, 8)
    if padded > tile:
        return _round_up(dim, tile), tile
    half = _round_up((padded + 1) // 2, 8)
    padded2 = _round_up(padded, half)
    if padded2 // half >= 2 and padded2 - padded <= 8:
        return padded2, half
    return padded, padded


# ----------------------------------------------------------------------------
# Wrappers
# ----------------------------------------------------------------------------

def _dense_forward(x, masked_w, bias, *, tm, tn, tk, compute_dtype,
                   max_resident_weight_bytes):
    B, K = x.shape
    N = masked_w.shape[0]
    out_dtype = x.dtype

    Bp, tm_ = _pick_batch(B, tm)
    Np, tn_ = _pick(N, tn, 128)
    Kp, tk_ = _pick(K, tk, 128)
    nk, nj = Kp // tk_, Np // tn_

    # (K, N) layout: MXU contracts x's last dim against W's first dim, no
    # in-kernel transpose. mask-mul + transpose + bf16 cast + pad fuse into a
    # single wrapper-side XLA op, done once per call.
    wt = masked_w.T.astype(compute_dtype)
    if (Kp, Np) != (K, N):
        wt = jnp.pad(wt, ((0, Kp - K), (0, Np - N)))

    xp = x.astype(compute_dtype)
    if (Bp, Kp) != (B, K):            # skip the pad on already-aligned inputs
        xp = jnp.pad(xp, ((0, Bp - B), (0, Kp - K)))

    bp = bias if Np == N else jnp.pad(bias, (0, Np - N))
    bp = bp.reshape(1, Np).astype(jnp.float32)

    w_bytes = Kp * Np * np.dtype(compute_dtype).itemsize
    w_resident = w_bytes <= max_resident_weight_bytes

    if w_resident:
        # Blocked (tile-major) layout, constant block index => DMA'd to VMEM
        # exactly once; the kernel picks tile (k, j) with one dynamic index.
        w_arg = wt.reshape(nk, tk_, nj, tn_).transpose(0, 2, 1, 3)
        w_arg = w_arg.reshape(nk * nj, tk_, tn_)
        w_spec = pl.BlockSpec((nk * nj, tk_, tn_), lambda i, j, k: (0, 0, 0))
    else:
        w_arg = wt
        w_spec = pl.BlockSpec((tk_, tn_), lambda i, j, k: (k, j))

    grid = (Bp // tm_, Np // tn_, Kp // tk_)

    out = pl.pallas_call(
        _make_matmul_kernel(w_resident, nj),
        out_shape=jax.ShapeDtypeStruct((Bp, Np), out_dtype),
        grid_spec=pltpu.PrefetchScalarGridSpec(
            num_scalar_prefetch=0,
            grid=grid,
            in_specs=[
                pl.BlockSpec((tm_, tk_), lambda i, j, k: (i, k)),   # x
                w_spec,                                             # masked W
                pl.BlockSpec((1, tn_), lambda i, j, k: (0, j)),     # bias
            ],
            out_specs=pl.BlockSpec((tm_, tn_), lambda i, j, k: (i, j)),
            scratch_shapes=[pltpu.VMEM((tm_, tn_), jnp.float32)],
        ),
        compiler_params=pltpu.CompilerParams(
            dimension_semantics=("parallel", "parallel", "arbitrary"),
        ),
    )(xp, w_arg, bp)

    if (Bp, Np) != (B, N):
        out = out[:B, :N]
    return out


def _diag_forward(x, weight, filt, bias, *, tm):
    B, K = x.shape
    N = weight.shape[0]
    out_dtype = x.dtype

    # Diagonal mask => F.linear(x, filt*W, b) == x * diag(filt*W) + b.
    d = jnp.diagonal(filt * weight).astype(jnp.float32)    # (N,)

    Bp, tm_ = _pick_batch(B, tm)
    Np = _round_up(N, 128)

    xp = x
    if (Bp, Np) != (B, N):
        xp = jnp.pad(x, ((0, Bp - B), (0, Np - N)))
    dp = (d if Np == N else jnp.pad(d, (0, Np - N))).reshape(1, Np)
    bp = (bias if Np == N else jnp.pad(bias, (0, Np - N)))
    bp = bp.reshape(1, Np).astype(jnp.float32)

    out = pl.pallas_call(
        _diag_scale_kernel,
        out_shape=jax.ShapeDtypeStruct((Bp, Np), out_dtype),
        grid_spec=pltpu.PrefetchScalarGridSpec(
            num_scalar_prefetch=0,
            grid=(Bp // tm_,),
            in_specs=[
                pl.BlockSpec((tm_, Np), lambda i: (i, 0)),   # x
                pl.BlockSpec((1, Np), lambda i: (0, 0)),     # diag scale
                pl.BlockSpec((1, Np), lambda i: (0, 0)),     # bias
            ],
            out_specs=pl.BlockSpec((tm_, Np), lambda i: (i, 0)),
        ),
        compiler_params=pltpu.CompilerParams(
            dimension_semantics=("parallel",),
        ),
    )(xp, dp, bp)

    if (Bp, Np) != (B, N):
        out = out[:B, :N]
    return out


def filter_matrix_forward(x, weight, filt, bias, *,
                          tm=256, tn=256, tk=1024,
                          compute_dtype=jnp.bfloat16,
                          max_resident_weight_bytes=4 << 20,
                          diagonal_filter=None):
    """x: (B, in), weight/filt: (out, in), bias: (out,) -> (B, out)."""
    B, K = x.shape
    N, Kw = weight.shape
    assert Kw == K and filt.shape == weight.shape and bias.shape == (N,)

    if diagonal_filter is None:
        diagonal_filter = False
        if N == K:
            try:
                f_np = np.asarray(filt)      # fails for tracers -> dense path
            except Exception:
                f_np = None
            if f_np is not None:
                diagonal_filter = bool(np.all(f_np == np.diag(np.diag(f_np))))

    if diagonal_filter:
        return _diag_forward(x, weight, filt, bias, tm=tm)

    masked_w = filt * weight                  # constant mask applied once
    return _dense_forward(x, masked_w, bias, tm=tm, tn=tn, tk=tk,
                          compute_dtype=compute_dtype,
                          max_resident_weight_bytes=max_resident_weight_bytes)


# ----------------------------------------------------------------------------
# Parameter init (matches FilterMatrix.reset_parameters) and references
# ----------------------------------------------------------------------------

def init_params(key, in_features, out_features, *, identity_filter=True):
    stdv = 1.0 / math.sqrt(in_features)
    k_w, k_b, k_f = jax.random.split(key, 3)
    weight = jax.random.uniform(
        k_w, (out_features, in_features), jnp.float32, minval=-stdv, maxval=stdv)
    bias = jax.random.uniform(
        k_b, (out_features,), jnp.float32, minval=-stdv, maxval=stdv)
    if identity_filter:
        filt = jnp.eye(out_features, in_features, dtype=jnp.float32)
    else:
        filt = (jax.random.uniform(k_f, (out_features, in_features)) > 0.5
                ).astype(jnp.float32)
    return weight, filt, bias


def _reference(x, weight, filt, bias):
    return (jnp.einsum("bk,nk->bn", x, filt * weight,
                       precision=lax.Precision.HIGHEST) + bias)


def _reference_bf16(x, weight, filt, bias):
    # Same operand rounding as the kernel (bf16 operands, f32 accumulation).
    xb = x.astype(jnp.bfloat16).astype(jnp.float32)
    wb = (filt * weight).astype(jnp.bfloat16).astype(jnp.float32)
    return (jnp.einsum("bk,nk->bn", xb, wb,
                       precision=lax.Precision.HIGHEST) + bias)


if __name__ == "__main__":
    key = jax.random.PRNGKey(0)
    k1, k2, k3, k4 = jax.random.split(key, 4)

    # Case 1: GRU-D identity filter -> diagonal fast path (VPU only, f32).
    B1, F1 = 8, 32
    x1 = jax.random.normal(k1, (B1, F1), dtype=jnp.float32)
    w1, f1, b1 = init_params(k2, F1, F1, identity_filter=True)
    out1 = jax.block_until_ready(filter_matrix_forward(x1, w1, f1, b1))
    ref1 = _reference(x1, w1, f1, b1)
    assert out1.shape == (B1, F1)
    assert jnp.allclose(out1, ref1, atol=1e-4, rtol=1e-4), "diag path mismatch"

    # Case 1b: same inputs, dense MXU path forced (bf16 operands, f32 accum),
    # tiny single-tile grid.
    out1b = jax.block_until_ready(
        filter_matrix_forward(x1, w1, f1, b1, diagonal_filter=False))
    ref1b = _reference_bf16(x1, w1, f1, b1)
    assert jnp.allclose(out1b, ref1b, atol=2e-3, rtol=2e-3), "dense small mismatch"

    # Case 2: dense random mask — exercises batch split (2 parallel blocks),
    # N tiling, padding, and the VMEM-resident weight path.
    B2, K2, N2 = 40, 640, 384
    x2 = jax.random.normal(k3, (B2, K2), dtype=jnp.float32)
    w2, f2, b2 = init_params(k4, K2, N2, identity_filter=False)
    out2 = jax.block_until_ready(filter_matrix_forward(x2, w2, f2, b2))
    ref2_bf16 = _reference_bf16(x2, w2, f2, b2)
    ref2_f32 = _reference(x2, w2, f2, b2)
    assert out2.shape == (B2, N2)
    assert jnp.allclose(out2, ref2_bf16, atol=2e-3, rtol=2e-3), "dense mismatch"
    assert jnp.allclose(out2, ref2_f32, atol=3e-2, rtol=3e-2), "bf16 drift too large"

    # Case 3: same data, force streamed (non-resident) weight and a multi-step
    # k reduction (exercises accumulator init / accumulate / epilogue gating).
    out3 = jax.block_until_ready(
        filter_matrix_forward(x2, w2, f2, b2, tk=256,
                              max_resident_weight_bytes=0))
    assert jnp.allclose(out3, ref2_bf16, atol=2e-3, rtol=2e-3), "streamed mismatch"

    print("KERNEL_OK")
</pallas_src>

<mosaic_0001>
module attributes {stable_mosaic.version = 11 : i64} {
  func.func @_diag_scale_kernel(%arg0: i32, %arg1: memref<8x128xf32, #tpu.memory_space<vmem>>, %arg2: memref<1x128xf32, #tpu.memory_space<vmem>>, %arg3: memref<1x128xf32, #tpu.memory_space<vmem>>, %arg4: memref<8x128xf32, #tpu.memory_space<vmem>>) attributes {dimension_semantics = [#tpu.dimension_semantics<parallel>], iteration_bounds = array<i64: 1>, scalar_prefetch = 0 : i64, scratch_operands = 0 : i64, tpu.core_type = #tpu.core_type<tc>, window_params = [{transform_indices = @transform_0, window_bounds = array<i64: 8, 128>}, {pipeline_mode = #tpu.pipeline_mode<synchronous>, transform_indices = @transform_1, window_bounds = array<i64: 1, 128>}, {pipeline_mode = #tpu.pipeline_mode<synchronous>, transform_indices = @transform_2, window_bounds = array<i64: 1, 128>}, {transform_indices = @transform_3, window_bounds = array<i64: 8, 128>}]} {
    %c0 = arith.constant 0 : index
    %c0_0 = arith.constant 0 : index
    %0 = vector.load %arg1[%c0, %c0_0] : memref<8x128xf32, #tpu.memory_space<vmem>>, vector<8x128xf32>
    %c0_1 = arith.constant 0 : index
    %c0_2 = arith.constant 0 : index
    %1 = vector.load %arg2[%c0_1, %c0_2] : memref<1x128xf32, #tpu.memory_space<vmem>>, vector<1x128xf32>
    %2 = vector.broadcast %1 : vector<1x128xf32> to vector<8x128xf32>
    %3 = arith.mulf %0, %2 : vector<8x128xf32>
    %c0_3 = arith.constant 0 : index
    %c0_4 = arith.constant 0 : index
    %4 = vector.load %arg3[%c0_3, %c0_4] : memref<1x128xf32, #tpu.memory_space<vmem>>, vector<1x128xf32>
    %5 = vector.broadcast %4 : vector<1x128xf32> to vector<8x128xf32>
    %6 = arith.addf %3, %5 : vector<8x128xf32>
    %c0_5 = arith.constant 0 : index
    %c0_6 = arith.constant 0 : index
    %7 = vector.load %arg4[%c0_5, %c0_6] : memref<8x128xf32, #tpu.memory_space<vmem>>, vector<8x128xf32>
    tpu.vector_store %arg4[%c0_5, %c0_6], %6 {strides = array<i32>} : memref<8x128xf32, #tpu.memory_space<vmem>>, vector<8x128xf32>,
    return
  }
  func.func @transform_0(%arg0: i32) -> (i32, i32) {
    %c0_i32 = arith.constant 0 : i32
    %c0_i32_0 = arith.constant 0 : i32
    return %arg0, %c0_i32 : i32, i32
  }
  func.func @transform_1(%arg0: i32) -> (i32, i32) {
    %c0_i32 = arith.constant 0 : i32
    %c0_i32_0 = arith.constant 0 : i32
    %c0_i32_1 = arith.constant 0 : i32
    return %c0_i32, %c0_i32_0 : i32, i32
  }
  func.func @transform_2(%arg0: i32) -> (i32, i32) {
    %c0_i32 = arith.constant 0 : i32
    %c0_i32_0 = arith.constant 0 : i32
    %c0_i32_1 = arith.constant 0 : i32
    return %c0_i32, %c0_i32_0 : i32, i32
  }
  func.func @transform_3(%arg0: i32) -> (i32, i32) {
    %c0_i32 = arith.constant 0 : i32
    %c0_i32_0 = arith.constant 0 : i32
    return %arg0, %c0_i32 : i32, i32
  }
}

</mosaic_0001>

<bundles_post_ra>
// kernel: tpu_custom_call.1
= control target key start
LH: loop header
LB: loop body
LE: loop exit
PB: predicated region body
PF: predicated region fallthrough
CT: control target
= control target key end

     0   :  { %8 = vsyncpa [#allocation3], 0  ;;  %s164_s0 = inlined_call_operand.hbm [shape: f32[8,128], index: 0, kind: input, shape index: {}]   ;;  %s165_s1 = inlined_call_operand.vmem [shape: f32[1,128], index: 1, kind: input, shape index: {}]   ;;  %s166_s2 = inlined_call_operand.vmem [shape: f32[1,128], index: 2, kind: input, shape index: {}]   ;;  %s167_s3 = inlined_call_operand.hbm [shape: f32[8,128], index: 3, kind: output, shape index: {}]  }
   0x1   :  { %9 = vsyncpa [#allocation4], 0  ;;  %s112_s12 = smov [#allocation2]   ;;  %s64_s16 = scalar_lea.hbm %s164_s0, 128 }
   0x2   :  { %s16_s13 = sshll.u32 %s112_s12, 4  ;;  %p65_p0 = scmp.ne.s32.totalorder %s164_s0, %s64_s16  ;;  %s17_s13 = int_to_ptr.vmem [resolvable:$true] %s16_s13 }
   0x3   :  { %p68_p1 = scmp.lt.u32.totalorder %s64_s16, %s164_s0 }
   0x5   :  { %p70_p2 = pnand %p68_p1, %p65_p0 }
   0x7   :  { %73 = shalt.err (!%p70_p2)
}
   0x8   :  { %s74_s21 = scalar_lea.vmem %s17_s13, 128  ;;  %p79_p4 = scmp.lt.s32.totalorder %s17_s13, %s17_s13 }
   0x9   :  { %p75_p3 = scmp.ne.s32.totalorder %s17_s13, %s74_s21  ;;  %p80_p5 = scmp.lt.s32.totalorder %s74_s21, %s74_s21 }
   0xb   :  { %p81_p6 = por %p80_p5, %p79_p4 }
   0xd   :  { %p82_p7 = pnand %p81_p6, %p75_p3 }
   0xf   :  { %85 = shalt.err (!%p82_p7)
}
  0x10   :  { %19 = dma.hbm_to_vmem [thread:$0]  %s164_s0, 128, %s17_s13, [#allocation3]  }
  0x11   :  { %108 = dma.done.wait [#allocation3], 128  }
  0x12   :  { %109 = vsyncadd [#allocation3], 4294967168  ;;  %v27_v0 = vld [vmem:[#allocation2] sm:$0xff]  ;;  %s113_s28 = smov [#allocation5]  }
  0x13   :  { %v60_v1 = vld [vmem:[%s165_s1] ss:$0 sm:$0xff]  ;;  %s51_s29 = sshll.u32 %s113_s28, 4  ;;  %s52_s29 = int_to_ptr.vmem [resolvable:$true] %s51_s29 }
  0x14   :  { %v61_v2 = vld [vmem:[%s166_s2] ss:$0 sm:$0xff]  ;;  %v35_v3 = vmul.f32 %v60_v1, %v27_v0  ;;  %s86_s30 = scalar_lea.vmem %s52_s29, 128  ;;  %p91_p9 = scmp.lt.s32.totalorder %s52_s29, %s52_s29 }
  0x15   :  { %p87_p8 = scmp.ne.s32.totalorder %s52_s29, %s86_s30  ;;  %p92_p10 = scmp.lt.s32.totalorder %s86_s30, %s86_s30 }
  0x16   :  { %v43_v4 = vadd.f32 %v61_v2, %v35_v3 }
  0x17   :  { %p93_p11 = por %p92_p10, %p91_p9 }
  0x18   :  { %44 = vst [vmem:[#allocation5] sm:$0xff] %v43_v4 }
  0x19   :  { %p94_p12 = pnand %p93_p11, %p87_p8 }
  0x1b   :  { %97 = shalt.err (!%p94_p12)
}
  0x1c   :  { %s98_s1 = scalar_lea.hbm %s167_s3, 128 }
  0x1d   :  { %p99_p13 = scmp.ne.s32.totalorder %s167_s3, %s98_s1  ;;  %p102_p0 = scmp.lt.u32.totalorder %s98_s1, %s167_s3 }
  0x1f   :  { %p104_p1 = pnand %p102_p0, %p99_p13 }
  0x21   :  { %107 = shalt.err (!%p104_p1)
}
  0x22   :  { %54 = dma.vmem_to_hbm [thread:$0]  %s52_s29, 128, %s167_s3, [#allocation4]  }
  0x23   :  { %110 = dma.done.wait [#allocation4], 128  }
  0x24   :  { %111 = vsyncadd [#allocation4], 4294967168 }
  0x25   :  { %58 = vsyncpa [#allocation3], 1 }
  0x26   :  { %59 = vsyncpa [#allocation4], 1 }

</bundles_post_ra>
